<compile_context>
chip_gen: v7x
topology: tpu7x:2x2x1
jax: 0.10.0
libtpu: 0.0.40
codegen_flags: <defaults>
</compile_context>

<pallas_src>
import functools

import jax
import jax.numpy as jnp
import numpy as np
from jax.experimental import pallas as pl
from jax.experimental.pallas import tpu as pltpu


NEG_INF = -1e30


def _round_up(x, m):
    return -(-x // m) * m


# ------------------------------ Pallas kernel ------------------------------ #

def _textcnn_fused_kernel(emb_ref, wconv_ref, bconv_ref, mask_ref, wfc_ref,
                          bfc_ref, o_ref, *, compute_dtype):
    """Fused conv + ReLU + max-pool + FC for one batch tile.

    emb_ref   : (TB, Lp, D)     compute_dtype  zero-padded token embeddings
    wconv_ref : (Kmax*D, Npad)  compute_dtype  packed conv filters (zero pad)
    bconv_ref : (1, Npad)       f32            conv biases (0 on pad columns)
    mask_ref  : (Lo, Npad)      f32            0 / -1e30 window-validity mask
    wfc_ref   : (Npad, Cpad)    compute_dtype  FC weight (zero padded)
    bfc_ref   : (1, Cpad)       f32            FC bias   (zero padded)
    o_ref     : (TB, Cpad)      f32            logits (real classes in [:C])
    """
    TB, Lp, D = emb_ref.shape
    KD, Npad = wconv_ref.shape
    Kmax = KD // D
    Lo = mask_ref.shape[0]

    emb = emb_ref[...]                                          # (TB, Lp, D)

    # Conv-as-matmul without materializing x_unf in HBM: accumulate Kmax
    # shifted, flattened (TB*Lo, D) @ (D, Npad) MXU matmuls.  Rows
    # k*D:(k+1)*D of the packed filter matrix hold the weights for window
    # offset k (row-major (k, d), matching weight.reshape(Knum, K*D)).
    s = jnp.zeros((TB * Lo, Npad), jnp.float32)
    for k in range(Kmax):                       # static unroll, Kmax is small
        xk = emb[:, k:k + Lo, :].reshape(TB * Lo, D)
        s = s + jnp.dot(xk, wconv_ref[k * D:(k + 1) * D, :],
                        preferred_element_type=jnp.float32)

    # Knock out window positions that are invalid for a given kernel size
    # (and the sublane-padding rows), then max-pool over the length axis.
    s = s.reshape(TB, Lo, Npad) + mask_ref[...][None, :, :]
    pooled = jnp.max(s, axis=1)                                 # (TB, Npad)

    # bias + ReLU after the pool (valid: bias constant over positions; ReLU
    # and max commute for a per-channel constant shift).
    feat = jnp.maximum(pooled + bconv_ref[...], 0.0)            # (TB, Npad)

    # Final Linear (dropout == identity in eval).
    o_ref[...] = (
        jnp.dot(feat.astype(compute_dtype), wfc_ref[...],
                preferred_element_type=jnp.float32)
        + bfc_ref[...]
    )


# ------------------------------- Model glue -------------------------------- #

def init_params(key, vocab_size, embed_dim, class_num, kernel_num,
                kernel_sizes):
    """PyTorch-default-like initialization, PyTorch-like parameter layout."""
    ks = jax.random.split(key, 2 * len(kernel_sizes) + 3)
    params = {}
    # nn.Embedding default init ~ N(0, 1)
    params["embed"] = jax.random.normal(ks[0], (vocab_size, embed_dim),
                                        dtype=jnp.float32)
    convs = []
    for i, K in enumerate(kernel_sizes):
        fan_in = 1 * K * embed_dim
        bound = float(1.0 / np.sqrt(fan_in))
        # PyTorch Conv2d weight (Knum, 1, K, D) stored here as (Knum, K, D)
        w = jax.random.uniform(ks[1 + 2 * i], (kernel_num, K, embed_dim),
                               minval=-bound, maxval=bound, dtype=jnp.float32)
        b = jax.random.uniform(ks[2 + 2 * i], (kernel_num,),
                               minval=-bound, maxval=bound, dtype=jnp.float32)
        convs.append((w, b))
    params["convs"] = convs
    fc_in = len(kernel_sizes) * kernel_num
    bound = float(1.0 / np.sqrt(fc_in))
    params["fc_w"] = jax.random.uniform(ks[-2], (class_num, fc_in),
                                        minval=-bound, maxval=bound,
                                        dtype=jnp.float32)
    params["fc_b"] = jax.random.uniform(ks[-1], (class_num,),
                                        minval=-bound, maxval=bound,
                                        dtype=jnp.float32)
    return params


@functools.partial(jax.jit,
                   static_argnames=("kernel_sizes", "batch_tile",
                                    "compute_dtype"))
def textcnn_forward(params, token_ids, kernel_sizes, *, batch_tile=128,
                    compute_dtype=jnp.bfloat16):
    Ks = tuple(kernel_sizes)
    B, L = token_ids.shape
    D = params["embed"].shape[1]
    Knum = params["convs"][0][0].shape[0]
    C = params["fc_w"].shape[0]
    Kmax, Kmin = max(Ks), min(Ks)
    if L < Kmax:
        raise ValueError(f"sequence length {L} < max kernel size {Kmax}")

    F = len(Ks) * Knum
    Lo = _round_up(L - Kmin + 1, 8)       # window positions, sublane aligned
    Lp = Lo + Kmax - 1                    # padded sequence length
    KD = Kmax * D
    Npad = _round_up(max(F, 128), 128)    # lane-dense pooled-feature width
    Cpad = _round_up(max(C, 128), 128)    # lane-dense logits width

    # ---- pack all conv filters into one (Kmax*D, Npad) matrix ------------- #
    wconv = jnp.zeros((KD, Npad), jnp.float32)
    bconv = jnp.zeros((1, Npad), jnp.float32)
    col = 0
    for K, (w, b) in zip(Ks, params["convs"]):
        wconv = wconv.at[:K * D, col:col + Knum].set(w.reshape(Knum, K * D).T)
        bconv = bconv.at[0, col:col + Knum].set(b)
        col += Knum

    # window-validity mask: position t invalid for kernel size K if
    # t >= L - K + 1 (also masks the sublane padding rows).  Static array.
    mask_np = np.zeros((Lo, Npad), np.float32)
    col = 0
    for K in Ks:
        mask_np[L - K + 1:, col:col + Knum] = NEG_INF
        col += Knum
    mask = jnp.asarray(mask_np)

    # ---- FC weight, padded so feature and class axes are lane dense ------- #
    wfc = jnp.zeros((Npad, Cpad), jnp.float32).at[:F, :C].set(params["fc_w"].T)
    bfc = jnp.zeros((1, Cpad), jnp.float32).at[0, :C].set(params["fc_b"])

    # ---- embedding lookup (gather stays in plain JAX) + padding ------------ #
    emb = params["embed"][token_ids].astype(compute_dtype)     # (B, L, D)
    TB = batch_tile if B >= batch_tile else B
    Bp = _round_up(B, TB)
    emb = jnp.pad(emb, ((0, Bp - B), (0, Lp - L), (0, 0)))

    kernel = functools.partial(_textcnn_fused_kernel,
                               compute_dtype=compute_dtype)
    out = pl.pallas_call(
        kernel,
        out_shape=jax.ShapeDtypeStruct((Bp, Cpad), jnp.float32),
        grid_spec=pltpu.PrefetchScalarGridSpec(
            num_scalar_prefetch=0,
            grid=(Bp // TB,),
            in_specs=[
                pl.BlockSpec((TB, Lp, D), lambda i: (i, 0, 0)),   # emb tile
                pl.BlockSpec((KD, Npad), lambda i: (0, 0)),       # conv W
                pl.BlockSpec((1, Npad), lambda i: (0, 0)),        # conv b
                pl.BlockSpec((Lo, Npad), lambda i: (0, 0)),       # mask
                pl.BlockSpec((Npad, Cpad), lambda i: (0, 0)),     # fc W
                pl.BlockSpec((1, Cpad), lambda i: (0, 0)),        # fc b
            ],
            out_specs=pl.BlockSpec((TB, Cpad), lambda i: (i, 0)),
        ),
        compiler_params=pltpu.CompilerParams(
            dimension_semantics=("parallel",),
        ),
    )(emb, wconv.astype(compute_dtype), bconv, mask,
      wfc.astype(compute_dtype), bfc)
    return out[:B, :C]


def textcnn_reference(params, token_ids, kernel_sizes):
    """Pure-JAX f32 reference of the PyTorch forward (dropout = identity)."""
    emb = params["embed"][token_ids]                           # (B, L, D)
    B, L, D = emb.shape
    feats = []
    for K, (w, b) in zip(kernel_sizes, params["convs"]):
        Knum = w.shape[0]
        Lo = L - K + 1
        win = jnp.stack(
            [emb[:, t:t + K, :].reshape(B, K * D) for t in range(Lo)], axis=1)
        s = jnp.einsum("blk,nk->bln", win, w.reshape(Knum, K * D))
        s = jnp.maximum(s + b[None, None, :], 0.0)
        feats.append(jnp.max(s, axis=1))
    feat = jnp.concatenate(feats, axis=1)
    return feat @ params["fc_w"].T + params["fc_b"][None, :]


if __name__ == "__main__":
    # small, forward-consistent config
    VOCAB = 50
    EMBED_DIM = 32
    CLASS_NUM = 4
    KERNEL_NUM = 8
    KERNEL_SIZES = (3, 4, 5)
    B, L = 2, 16

    key = jax.random.PRNGKey(0)
    pkey, xkey = jax.random.split(key)
    params = init_params(pkey, VOCAB, EMBED_DIM, CLASS_NUM, KERNEL_NUM,
                         KERNEL_SIZES)
    token_ids = jax.random.randint(xkey, (B, L), 0, VOCAB, dtype=jnp.int32)

    logits = textcnn_forward(params, token_ids, KERNEL_SIZES)
    jax.block_until_ready(logits)
    assert logits.shape == (B, CLASS_NUM), logits.shape

    # sanity check vs. pure-JAX f32 reference (loose tol: bf16 matmul inputs)
    ref = textcnn_reference(params, token_ids, KERNEL_SIZES)
    np.testing.assert_allclose(np.asarray(logits), np.asarray(ref),
                               rtol=1e-1, atol=1e-1)
    print("KERNEL_OK")
</pallas_src>

<mosaic_0001>
module attributes {stable_mosaic.version = 11 : i64} {
  func.func @_textcnn_fused_kernel(%arg0: i32, %arg1: memref<2x20x32xbf16, #tpu.memory_space<vmem>>, %arg2: memref<160x128xbf16, #tpu.memory_space<vmem>>, %arg3: memref<1x128xf32, #tpu.memory_space<vmem>>, %arg4: memref<16x128xf32, #tpu.memory_space<vmem>>, %arg5: memref<128x128xbf16, #tpu.memory_space<vmem>>, %arg6: memref<1x128xf32, #tpu.memory_space<vmem>>, %arg7: memref<2x128xf32, #tpu.memory_space<vmem>>) attributes {dimension_semantics = [#tpu.dimension_semantics<parallel>], iteration_bounds = array<i64: 1>, scalar_prefetch = 0 : i64, scratch_operands = 0 : i64, tpu.core_type = #tpu.core_type<tc>, window_params = [{transform_indices = @transform_0, window_bounds = array<i64: 2, 20, 32>}, {pipeline_mode = #tpu.pipeline_mode<synchronous>, transform_indices = @transform_1, window_bounds = array<i64: 160, 128>}, {pipeline_mode = #tpu.pipeline_mode<synchronous>, transform_indices = @transform_2, window_bounds = array<i64: 1, 128>}, {pipeline_mode = #tpu.pipeline_mode<synchronous>, transform_indices = @transform_3, window_bounds = array<i64: 16, 128>}, {pipeline_mode = #tpu.pipeline_mode<synchronous>, transform_indices = @transform_4, window_bounds = array<i64: 128, 128>}, {pipeline_mode = #tpu.pipeline_mode<synchronous>, transform_indices = @transform_5, window_bounds = array<i64: 1, 128>}, {transform_indices = @transform_6, window_bounds = array<i64: 2, 128>}]} {
    %c0 = arith.constant 0 : index
    %c0_0 = arith.constant 0 : index
    %c0_1 = arith.constant 0 : index
    %0 = vector.load %arg1[%c0, %c0_0, %c0_1] : memref<2x20x32xbf16, #tpu.memory_space<vmem>>, vector<2x20x32xbf16>
    %cst = arith.constant 0.000000e+00 : f32
    %1 = vector.broadcast %cst : f32 to vector<32x128xf32>
    %2 = vector.extract_strided_slice %0 {offsets = [0, 0, 0], sizes = [2, 16, 32], strides = [1, 1, 1]} : vector<2x20x32xbf16> to vector<2x16x32xbf16>
    %3 = vector.shape_cast %2 : vector<2x16x32xbf16> to vector<32x32xbf16>
    %c0_2 = arith.constant 0 : index
    %c0_3 = arith.constant 0 : index
    %4 = vector.load %arg2[%c0_2, %c0_3] : memref<160x128xbf16, #tpu.memory_space<vmem>>, vector<32x128xbf16>
    %cst_4 = arith.constant dense<0.000000e+00> : vector<32x128xf32>
    %5 = tpu.matmul %3, %4, %cst_4 {dimension_numbers = #tpu.dot_dimension_numbers<[1], [0], [0], [1], [0, 0, 1, 1], [], []>} : vector<32x32xbf16>, vector<32x128xbf16>, vector<32x128xf32> -> vector<32x128xf32>
    %6 = arith.addf %1, %5 : vector<32x128xf32>
    %7 = vector.extract_strided_slice %0 {offsets = [0, 1, 0], sizes = [2, 16, 32], strides = [1, 1, 1]} : vector<2x20x32xbf16> to vector<2x16x32xbf16>
    %8 = vector.shape_cast %7 : vector<2x16x32xbf16> to vector<32x32xbf16>
    %c32 = arith.constant 32 : index
    %c0_5 = arith.constant 0 : index
    %9 = vector.load %arg2[%c32, %c0_5] : memref<160x128xbf16, #tpu.memory_space<vmem>>, vector<32x128xbf16>
    %cst_6 = arith.constant dense<0.000000e+00> : vector<32x128xf32>
    %10 = tpu.matmul %8, %9, %cst_6 {dimension_numbers = #tpu.dot_dimension_numbers<[1], [0], [0], [1], [0, 0, 1, 1], [], []>} : vector<32x32xbf16>, vector<32x128xbf16>, vector<32x128xf32> -> vector<32x128xf32>
    %11 = arith.addf %6, %10 : vector<32x128xf32>
    %12 = vector.extract_strided_slice %0 {offsets = [0, 2, 0], sizes = [2, 16, 32], strides = [1, 1, 1]} : vector<2x20x32xbf16> to vector<2x16x32xbf16>
    %13 = vector.shape_cast %12 : vector<2x16x32xbf16> to vector<32x32xbf16>
    %c64 = arith.constant 64 : index
    %c0_7 = arith.constant 0 : index
    %14 = vector.load %arg2[%c64, %c0_7] : memref<160x128xbf16, #tpu.memory_space<vmem>>, vector<32x128xbf16>
    %cst_8 = arith.constant dense<0.000000e+00> : vector<32x128xf32>
    %15 = tpu.matmul %13, %14, %cst_8 {dimension_numbers = #tpu.dot_dimension_numbers<[1], [0], [0], [1], [0, 0, 1, 1], [], []>} : vector<32x32xbf16>, vector<32x128xbf16>, vector<32x128xf32> -> vector<32x128xf32>
    %16 = arith.addf %11, %15 : vector<32x128xf32>
    %17 = vector.extract_strided_slice %0 {offsets = [0, 3, 0], sizes = [2, 16, 32], strides = [1, 1, 1]} : vector<2x20x32xbf16> to vector<2x16x32xbf16>
    %18 = vector.shape_cast %17 : vector<2x16x32xbf16> to vector<32x32xbf16>
    %c96 = arith.constant 96 : index
    %c0_9 = arith.constant 0 : index
    %19 = vector.load %arg2[%c96, %c0_9] : memref<160x128xbf16, #tpu.memory_space<vmem>>, vector<32x128xbf16>
    %cst_10 = arith.constant dense<0.000000e+00> : vector<32x128xf32>
    %20 = tpu.matmul %18, %19, %cst_10 {dimension_numbers = #tpu.dot_dimension_numbers<[1], [0], [0], [1], [0, 0, 1, 1], [], []>} : vector<32x32xbf16>, vector<32x128xbf16>, vector<32x128xf32> -> vector<32x128xf32>
    %21 = arith.addf %16, %20 : vector<32x128xf32>
    %22 = vector.extract_strided_slice %0 {offsets = [0, 4, 0], sizes = [2, 16, 32], strides = [1, 1, 1]} : vector<2x20x32xbf16> to vector<2x16x32xbf16>
    %23 = vector.shape_cast %22 : vector<2x16x32xbf16> to vector<32x32xbf16>
    %c128 = arith.constant 128 : index
    %c0_11 = arith.constant 0 : index
    %24 = vector.load %arg2[%c128, %c0_11] : memref<160x128xbf16, #tpu.memory_space<vmem>>, vector<32x128xbf16>
    %cst_12 = arith.constant dense<0.000000e+00> : vector<32x128xf32>
    %25 = tpu.matmul %23, %24, %cst_12 {dimension_numbers = #tpu.dot_dimension_numbers<[1], [0], [0], [1], [0, 0, 1, 1], [], []>} : vector<32x32xbf16>, vector<32x128xbf16>, vector<32x128xf32> -> vector<32x128xf32>
    %26 = arith.addf %21, %25 : vector<32x128xf32>
    %27 = vector.shape_cast %26 : vector<32x128xf32> to vector<2x16x128xf32>
    %c0_13 = arith.constant 0 : index
    %c0_14 = arith.constant 0 : index
    %28 = vector.load %arg4[%c0_13, %c0_14] : memref<16x128xf32, #tpu.memory_space<vmem>>, vector<16x128xf32>
    %29 = vector.shape_cast %28 : vector<16x128xf32> to vector<1x16x128xf32>
    %30 = vector.broadcast %29 : vector<1x16x128xf32> to vector<2x16x128xf32>
    %31 = arith.addf %27, %30 : vector<2x16x128xf32>
    %cst_15 = arith.constant dense<0xFF800000> : vector<2x128xf32>
    %32 = vector.multi_reduction <maximumf>, %31, %cst_15 [1] : vector<2x16x128xf32> to vector<2x128xf32>
    %c0_16 = arith.constant 0 : index
    %c0_17 = arith.constant 0 : index
    %33 = vector.load %arg3[%c0_16, %c0_17] : memref<1x128xf32, #tpu.memory_space<vmem>>, vector<1x128xf32>
    %34 = vector.broadcast %33 : vector<1x128xf32> to vector<2x128xf32>
    %35 = arith.addf %32, %34 : vector<2x128xf32>
    %cst_18 = arith.constant 0.000000e+00 : f32
    %36 = vector.broadcast %cst_18 : f32 to vector<2x128xf32>
    %37 = arith.maximumf %35, %36 : vector<2x128xf32>
    %38 = arith.truncf %37 : vector<2x128xf32> to vector<2x128xbf16>
    %c0_19 = arith.constant 0 : index
    %c0_20 = arith.constant 0 : index
    %39 = vector.load %arg5[%c0_19, %c0_20] : memref<128x128xbf16, #tpu.memory_space<vmem>>, vector<128x128xbf16>
    %cst_21 = arith.constant dense<0.000000e+00> : vector<2x128xf32>
    %40 = tpu.matmul %38, %39, %cst_21 {dimension_numbers = #tpu.dot_dimension_numbers<[1], [0], [0], [1], [0, 0, 1, 1], [], []>} : vector<2x128xbf16>, vector<128x128xbf16>, vector<2x128xf32> -> vector<2x128xf32>
    %c0_22 = arith.constant 0 : index
    %c0_23 = arith.constant 0 : index
    %41 = vector.load %arg6[%c0_22, %c0_23] : memref<1x128xf32, #tpu.memory_space<vmem>>, vector<1x128xf32>
    %42 = vector.broadcast %41 : vector<1x128xf32> to vector<2x128xf32>
    %43 = arith.addf %40, %42 : vector<2x128xf32>
    %c0_24 = arith.constant 0 : index
    %c0_25 = arith.constant 0 : index
    %44 = vector.load %arg7[%c0_24, %c0_25] : memref<2x128xf32, #tpu.memory_space<vmem>>, vector<2x128xf32>
    tpu.vector_store %arg7[%c0_24, %c0_25], %43 {strides = array<i32>} : memref<2x128xf32, #tpu.memory_space<vmem>>, vector<2x128xf32>,
    return
  }
  func.func @transform_0(%arg0: i32) -> (i32, i32, i32) {
    %c0_i32 = arith.constant 0 : i32
    %c0_i32_0 = arith.constant 0 : i32
    %c0_i32_1 = arith.constant 0 : i32
    return %arg0, %c0_i32, %c0_i32_0 : i32, i32, i32
  }
  func.func @transform_1(%arg0: i32) -> (i32, i32) {
    %c0_i32 = arith.constant 0 : i32
    %c0_i32_0 = arith.constant 0 : i32
    %c0_i32_1 = arith.constant 0 : i32
    return %c0_i32, %c0_i32_0 : i32, i32
  }
  func.func @transform_2(%arg0: i32) -> (i32, i32) {
    %c0_i32 = arith.constant 0 : i32
    %c0_i32_0 = arith.constant 0 : i32
    %c0_i32_1 = arith.constant 0 : i32
    return %c0_i32, %c0_i32_0 : i32, i32
  }
  func.func @transform_3(%arg0: i32) -> (i32, i32) {
    %c0_i32 = arith.constant 0 : i32
    %c0_i32_0 = arith.constant 0 : i32
    %c0_i32_1 = arith.constant 0 : i32
    return %c0_i32, %c0_i32_0 : i32, i32
  }
  func.func @transform_4(%arg0: i32) -> (i32, i32) {
    %c0_i32 = arith.constant 0 : i32
    %c0_i32_0 = arith.constant 0 : i32
    %c0_i32_1 = arith.constant 0 : i32
    return %c0_i32, %c0_i32_0 : i32, i32
  }
  func.func @transform_5(%arg0: i32) -> (i32, i32) {
    %c0_i32 = arith.constant 0 : i32
    %c0_i32_0 = arith.constant 0 : i32
    %c0_i32_1 = arith.constant 0 : i32
    return %c0_i32, %c0_i32_0 : i32, i32
  }
  func.func @transform_6(%arg0: i32) -> (i32, i32) {
    %c0_i32 = arith.constant 0 : i32
    %c0_i32_0 = arith.constant 0 : i32
    return %arg0, %c0_i32 : i32, i32
  }
}

</mosaic_0001>

<bundles_post_ra>
// kernel: textcnn_forward.1
= control target key start
LH: loop header
LB: loop body
LE: loop exit
PB: predicated region body
PF: predicated region fallthrough
CT: control target
= control target key end

     0   :  { %vm35_vm0 = vsmask.f32 3328  ;;  %vm36_vm1 = vsmask.f32 7440  ;;  %vm108_vm3 = vcmask 261120   ;;  %vm243_vm4 = vcmask 1042432   ;;  %s1174_s0 = inlined_call_operand.vmem [shape: bf16[2,20,32], index: 0, kind: input, shape index: {}]   ;;  %s1175_s1 = inlined_call_operand.vmem [shape: bf16[160,128], index: 1, kind: input, shape index: {}]   ;;  %s1176_s2 = inlined_call_operand.vmem [shape: f32[1,128], index: 2, kind: input, shape index: {}]   ;;  %s1177_s3 = inlined_call_operand.vmem [shape: f32[16,128], index: 3, kind: input, shape index: {}]   ;;  %s1178_s4 = inlined_call_operand.vmem [shape: bf16[128,128], index: 4, kind: input, shape index: {}]   ;;  %s1179_s5 = inlined_call_operand.vmem [shape: f32[1,128], index: 5, kind: input, shape index: {}]   ;;  %s1180_s6 = inlined_call_operand.hbm [shape: f32[2,128], index: 6, kind: output, shape index: {}]  }
   0x1   :  { %v873_v0 = vld [vmem:[%s1175_s1 + $0x10] sm:$0xff]   ;;  %v874_v1 = vld [vmem:[%s1175_s1 + $0x18] sm:$0xff]   ;;  %v964_v2 = vld [vmem:[%s1174_s0] sm:$0xf]  ;;  %vm244_vm5 = vcmask 1046532  }
   0x2   :  { %794 = vmatprep.subr.bf16.mxu0 %v873_v0  ;;  %v969_v3 = vld [vmem:[%s1174_s0 + $0x4] sm:$0xf]  ;;  %v974_v4 = vld [vmem:[%s1174_s0 + $0x8] sm:$0x3]  ;;  %v39_v5 = vshrl.u32 %v964_v2, 16  ;;  %v42_v6 = vshll.u32 %v964_v2, 16  ;;  %vm1002_vm2 = vmor %vm35_vm0, %vm36_vm1 }
   0x3   :  { %795 = vmatpush3.bf16.msra.mxu0 %v873_v0  ;;  %v48_v7 = vshll.u32 %v969_v3, 16  ;;  %v52_v8 = vshrl.u32 %v969_v3, 16  ;;  %v58_v9 = vshll.u32 %v974_v4, 16  ;;  %v875_v10 = vld [vmem:[%s1175_s1] sm:$0xff]   ;;  %v987_v15 = vld [vmem:[%s1174_s0 + $0xc] sm:$0xf]  ;;  %v727_v43 = vcombine.low %v964_v2, %v969_v3  ;;  %vm1043_vm6 = vmor %vm243_vm4, %vm244_vm5 }
   0x4   :  { %796 = vmatprep.subr.bf16.mxu0 %v874_v1  ;;  %v41_v11 = vrot.slane %v39_v5, 4  ;;  %v44_v12 = vrot.slane %v42_v6, 5  ;;  %v994_v18 = vld [vmem:[%s1174_s0 + $0x10] sm:$0xf]  ;;  %v999_v19 = vld [vmem:[%s1174_s0 + $0x14] sm:$0x3] }
   0x5   :  { %v50_v13 = vrot.slane %v48_v7, 5  ;;  %v54_v14 = vrot.slane %v52_v8, 4  ;;  %v60_v17 = vrot.slane %v58_v9, 5  ;;  %v63_v22 = vshrl.u32 %v987_v15, 16  ;;  %v876_v45 = vld [vmem:[%s1175_s1 + $0x8] sm:$0xff]   ;;  %v878_v47 = vld [vmem:[%s1175_s1 + $0x20] sm:$0xff]  }
   0x6   :  { %v45_v16 = vor.u32 %v44_v12, %v41_v11  ;;  %v66_v23 = vshll.u32 %v987_v15, 16  ;;  %v72_v24 = vshll.u32 %v994_v18, 16  ;;  %v76_v26 = vshrl.u32 %v994_v18, 16 }
   0x7   :  { %797 = vmatpush3.bf16.msra.mxu0 %v874_v1  ;;  %v55_v21 = vor.u32 %v54_v14, %v50_v13  ;;  %v82_v27 = vshll.u32 %v999_v19, 16  ;;  %v65_v29 = vrot.slane %v63_v22, 4  ;;  %v248_v46 = vrot.slane %v969_v3, 5 }
   0x8   :  { %802 = vmatprep.subr.bf16.mxu0 %v875_v10  ;;  %v46_v25 = vrot.slane %v45_v16, 4  ;;  %v68_v30 = vrot.slane %v66_v23, 5  ;;  %v74_v31 = vrot.slane %v72_v24, 5  ;;  %v78_v33 = vrot.slane %v76_v26, 4 }
   0x9   :  { %v56_v28 = vrot.slane %v55_v21, 4  ;;  %v84_v38 = vrot.slane %v82_v27, 5  ;;  %v733_v48 = vrot.slane %v964_v2, 9  ;;  %v250_v49 = vrot.slane %v248_v46, 4 }
   0xa   :  { %v51_v32 = vsel %vm1002_vm2, %v46_v25, %v50_v13  ;;  %v69_v35 = vor.u32 %v68_v30, %v65_v29  ;;  %v79_v37 = vor.u32 %v78_v33, %v74_v31  ;;  %v251_v50 = vrot.slane %v974_v4, 5 }
   0xb   :  { %v61_v34 = vsel %vm1002_vm2, %v56_v28, %v60_v17  ;;  %v344_v51 = vrot.slane %v39_v5, 5  ;;  %v345_v53 = vrot.slane %v42_v6, 6  ;;  %v348_v54 = vrot.slane %v52_v8, 5 }
   0xc   :  { %v721_v36 = vcombine.low %v51_v32, %v61_v34  ;;  %v70_v39 = vrot.slane %v69_v35, 4  ;;  %v80_v40 = vrot.slane %v79_v37, 4  ;;  %v349_v55 = vrot.slane %v48_v7, 6 }
   0xd   :  { %v353_v56 = vshrl.u32 %v974_v4, 16  ;;  %v249_v57 = vsel %vm1043_vm6, %v733_v48, %v248_v46  ;;  %v252_v58 = vsel %vm1043_vm6, %v250_v49, %v251_v50  ;;  %v728_v59 = vcombine.low %v987_v15, %v994_v18 }
   0xe   :  { %798 = vmatprep.mubr.msk.bf16.mxu0 %vm108_vm3, %v721_v36  ;;  %v75_v41 = vsel %vm1002_vm2, %v70_v39, %v74_v31  ;;  %v85_v42 = vsel %vm1002_vm2, %v80_v40, %v84_v38 }
   0xf   :  { %v722_v44 = vcombine.low %v75_v41, %v85_v42 }
  0x11   :  { %799 = vmatmul.mubr.msk.bf16.vlgmr.msra.gmra.mrb[0].mxu0 %vm108_vm3, %v722_v44 }
  0x12   :  { %803 = vmatpush3.bf16.msra.mxu0 %v875_v10  ;;  %806 = vmatprep.mubr.msk.bf16.mxu0 %vm108_vm3, %v727_v43 }
  0x13   :  { %804 = vmatprep.subr.bf16.mxu0 %v876_v45 }
  0x16   :  { %805 = vmatpush3.bf16.msra.mxu0 %v876_v45 }
  0x17   :  { %810 = vmatprep.subr.bf16.mxu0 %v878_v47 }
  0x18   :  { %11 = vsyncpa [#allocation3], 0  ;;  %v735_v60 = vcombine.low %v249_v57, %v252_v58  ;;  %v255_v61 = vrot.slane %v994_v18, 5  ;;  %v356_v62 = vrot.slane %v58_v9, 6  ;;  %v880_v63 = vld [vmem:[%s1175_s1 + $0x28] sm:$0xff]   ;;  %v346_v0 = vor.u32 %v345_v53, %v344_v51  ;;  %v881_v9 = vld [vmem:[%s1175_s1 + $0x30] sm:$0xff]  }
  0x19   :  { %v350_v1 = vor.u32 %v349_v55, %v348_v54  ;;  %v355_v5 = vrot.slane %v353_v56, 5  ;;  %vm341_vm7 = vsmask.f32 2304  ;;  %vm342_vm8 = vsmask.f32 6416  ;;  %v883_v37 = vld [vmem:[%s1175_s1 + $0x40] sm:$0xff]  }
  0x1a   :  { %v734_v6 = vrot.slane %v987_v15, 9  ;;  %v257_v7 = vrot.slane %v255_v61, 4  ;;  %v258_v8 = vrot.slane %v999_v19, 5  ;;  %v347_v10 = vrot.slane %v346_v0, 4  ;;  %vm1067_vm9 = vmor %vm341_vm7, %vm342_vm8  ;;  %v884_v46 = vld [vmem:[%s1175_s1 + $0x48] sm:$0xff]   ;;  %v885_v52 = vld [vmem:[%s1178_s4] sm:$0xff]  }
  0x1b   :  { %v352_v11 = vrot.slane %v350_v1, 4  ;;  %v357_v12 = vor.u32 %v356_v62, %v355_v5  ;;  %v359_v14 = vrot.slane %v63_v22, 5  ;;  %v360_v16 = vrot.slane %v66_v23, 6  ;;  %v888_v54 = vld [vmem:[%s1178_s4 + $0x18] sm:$0xff]   ;;  %v889_v55 = vld [vmem:[%s1178_s4 + $0x20] sm:$0xff]   ;;  %v890_v56 = vld [vmem:[%s1178_s4 + $0x28] sm:$0xff]  }
  0x1c   :  { %v364_v17 = vrot.slane %v72_v24, 6  ;;  %v256_v20 = vsel %vm1043_vm6, %v734_v6, %v255_v61  ;;  %v259_v21 = vsel %vm1043_vm6, %v257_v7, %v258_v8  ;;  %v363_v25 = vrot.slane %v76_v26, 5  ;;  %v882_v26 = vld [vmem:[%s1175_s1 + $0x38] sm:$0xff]   ;;  %v891_v57 = vld [vmem:[%s1178_s4 + $0x30] sm:$0xff]   ;;  %v554_v61 = vld [vmem:[%s1177_s3 + $0x8] sm:$0xff] }
  0x1d   :  { %807 = vmatmul.mubr.msk.bf16.vlgmr.msra.gmra.mrb[0].mxu0 %vm108_vm3, %v728_v59  ;;  %v368_v28 = vshrl.u32 %v999_v19, 16  ;;  %v351_v22 = vsel %vm1067_vm9, %v347_v10, %v350_v1  ;;  %v358_v23 = vsel %vm1067_vm9, %v352_v11, %v357_v12  ;;  %v371_v24 = vrot.slane %v82_v27, 6  ;;  %v892_v58 = vld [vmem:[%s1178_s4 + $0x38] sm:$0xff]  }
  0x1e   :  { %811 = vmatpush3.bf16.msra.mxu0 %v878_v47  ;;  %814 = vmatprep.mubr.msk.bf16.mxu0 %vm108_vm3, %v735_v60  ;;  %v736_v29 = vcombine.low %v256_v20, %v259_v21  ;;  %v741_v30 = vcombine.low %v351_v22, %v358_v23  ;;  %v361_v31 = vor.u32 %v360_v16, %v359_v14  ;;  %v460_v34 = vrot.slane %v969_v3, 6  ;;  %v553_v60 = vld [vmem:[%s1177_s3] sm:$0xff] }
  0x1f   :  { %812 = vmatprep.subr.bf16.mxu0 %v880_v63  ;;  %v365_v32 = vor.u32 %v364_v17, %v363_v25  ;;  %v370_v33 = vrot.slane %v368_v28, 5  ;;  %vm455_vm10 = vcmask 1041408   ;;  %vm456_vm11 = vcmask 1045508   ;;  %v755_v25 = vld [vmem:[%s1176_s2] ss:$0 sm:$0xff]  ;;  %s919_s2 = smov [#allocation2]  }
  0x20   :  { %v362_v35 = vrot.slane %v361_v31, 4  ;;  %v747_v38 = vrot.slane %v964_v2, 10  ;;  %v462_v39 = vrot.slane %v460_v34, 4  ;;  %v463_v3 = vrot.slane %v974_v4, 6  ;;  %vm1101_vm12 = vmor %vm455_vm10, %vm456_vm11  ;;  %s713_s24 = sshll.u32 %s919_s2, 4  ;;  %s714_s24 = int_to_ptr.vmem [resolvable:$true] %s713_s24 }
  0x21   :  { %v367_v27 = vrot.slane %v365_v32, 4  ;;  %v372_v36 = vor.u32 %v371_v24, %v370_v33  ;;  %v467_v45 = vrot.slane %v994_v18, 6  ;;  %v748_v47 = vrot.slane %v987_v15, 10  ;;  %v886_v15 = vld [vmem:[%s1178_s4 + $0x8] sm:$0xff]   ;;  %s893_s25 = scalar_lea.vmem %s714_s24, 32  ;;  %p898_p1 = scmp.lt.s32.totalorder %s714_s24, %s714_s24 }
  0x22   :  { %813 = vmatpush3.bf16.msra.mxu0 %v880_v63  ;;  %v366_v41 = vsel %vm1067_vm9, %v362_v35, %v365_v32  ;;  %v461_v43 = vsel %vm1101_vm12, %v747_v38, %v460_v34  ;;  %v464_v2 = vsel %vm1101_vm12, %v462_v39, %v463_v3  ;;  %v470_v49 = vrot.slane %v999_v19, 6  ;;  %v887_v19 = vld [vmem:[%s1178_s4 + $0x10] sm:$0xff]   ;;  %p894_p0 = scmp.ne.s32.totalorder %s714_s24, %s893_s25  ;;  %p899_p2 = scmp.lt.s32.totalorder %s893_s25, %s893_s25 }
  0x23   :  { %818 = vmatprep.subr.bf16.mxu0 %v881_v9  ;;  %v373_v42 = vsel %vm1067_vm9, %v367_v27, %v372_v36  ;;  %v749_v4 = vcombine.low %v461_v43, %v464_v2  ;;  %v469_v48 = vrot.slane %v467_v45, 4  ;;  %v468_v50 = vsel %vm1101_vm12, %v748_v47, %v467_v45 }
  0x24   :  { %v742_v44 = vcombine.low %v366_v41, %v373_v42  ;;  %v917_v53 = vmov 0.0   ;;  %vm918_vm13 = vmmov 0   ;;  %vm614_vm14 = vcmask 1041409   ;;  %p900_p3 = por %p899_p2, %p898_p1 }
  0x25   :  { %v471_v18 = vsel %vm1101_vm12, %v469_v48, %v470_v49  ;;  %834 = vmatprep.subr.bf16.mxu1 %v917_v53  ;;  %850 = vmatprep.mubr.msk.bf16.mxu1 %vm918_vm13, %v917_v53 }
  0x26   :  { %v750_v51 = vcombine.low %v468_v50, %v471_v18  ;;  %835 = vmatpush3.bf16.msra.mxu1 %v885_v52  ;;  %p901_p4 = pnand %p900_p3, %p894_p0 }
  0x27   :  { %836 = vmatprep.subr.bf16.mxu1 %v917_v53 }
  0x29   :  { %815 = vmatmul.mubr.msk.bf16.vlgmr.msra.gmra.mrb[0].mxu0 %vm108_vm3, %v736_v29 }
  0x2a   :  { %819 = vmatpush3.bf16.msra.mxu0 %v881_v9  ;;  %822 = vmatprep.mubr.msk.bf16.mxu0 %vm108_vm3, %v741_v30 }
  0x2b   :  { %820 = vmatprep.subr.bf16.mxu0 %v882_v26  ;;  %837 = vmatpush3.bf16.msra.mxu1 %v886_v15 }
  0x2c   :  { %838 = vmatprep.subr.bf16.mxu1 %v917_v53 }
  0x2e   :  { %821 = vmatpush3.bf16.msra.mxu0 %v882_v26 }
  0x2f   :  { %826 = vmatprep.subr.bf16.mxu0 %v883_v37  ;;  %839 = vmatpush3.bf16.msra.mxu1 %v887_v19 }
  0x30   :  { %840 = vmatprep.subr.bf16.mxu1 %v917_v53 }
  0x33   :  { %841 = vmatpush3.bf16.msra.mxu1 %v888_v54 }
  0x34   :  { %842 = vmatprep.subr.bf16.mxu1 %v917_v53 }
  0x35   :  { %823 = vmatmul.mubr.msk.bf16.vlgmr.msra.gmra.mrb[0].mxu0 %vm108_vm3, %v742_v44 }
  0x36   :  { %827 = vmatpush3.bf16.msra.mxu0 %v883_v37  ;;  %830 = vmatprep.mubr.msk.bf16.mxu0 %vm108_vm3, %v749_v4  ;;  %v756_v37 = vld [vmem:[%s1179_s5] ss:$0 sm:$0xff] }
  0x37   :  { %828 = vmatprep.subr.bf16.mxu0 %v884_v46  ;;  %843 = vmatpush3.bf16.msra.mxu1 %v889_v55 }
  0x38   :  { %844 = vmatprep.subr.bf16.mxu1 %v917_v53 }
  0x3a   :  { %829 = vmatpush3.bf16.msra.mxu0 %v884_v46 }
  0x3b   :  { %845 = vmatpush3.bf16.msra.mxu1 %v890_v56 }
  0x3c   :  { %846 = vmatprep.subr.bf16.mxu1 %v917_v53 }
  0x3f   :  { %847 = vmatpush3.bf16.msra.mxu1 %v891_v57 }
  0x40   :  { %848 = vmatprep.subr.bf16.mxu1 %v917_v53 }
  0x41   :  { %831 = vmatmul.mubr.msk.bf16.vlgmr.msra.gmra.mrb[0].mxu0 %vm108_vm3, %v750_v51 }
  0x43   :  { %849 = vmatpush3.bf16.msra.mxu1 %v892_v58 }
 0x114   :  { %v832_v59 = vpop.f32.mrb[0].mxu0 }
 0x115   :  { %v534_v62 = vpop.f32.mrb[1].mxu0  ;;  %v557_v0 = vadd.f32 %v832_v59, %v553_v60 }
 0x116   :  { %v833_v63 = vpop.f32.mrb[2].mxu0  ;;  %v555_v6 = vadd.f32 %v553_v60, %v534_v62 }
 0x117   :  { %v558_v1 = vadd.f32 %v833_v63, %v554_v61  ;;  %v537_v5 = vpop.f32.mrb[3].mxu0 }
 0x118   :  { %v556_v7 = vadd.f32 %v554_v61, %v537_v5 }
 0x119   :  { %v566_v8 = vmax.f32 %v557_v0, %v558_v1 }
 0x11a   :  { %v559_v9 = vmax.f32 %v555_v6, %v556_v7 }
 0x11b   :  { %v567_v10 = vrot.slane %v566_v8, 4 }
 0x11c   :  { %v560_v11 = vrot.slane %v559_v9, 4 }
 0x11d   :  { %v568_v12 = vmax.f32 %v566_v8, %v567_v10 }
 0x11e   :  { %v561_v13 = vmax.f32 %v559_v9, %v560_v11 }
 0x11f   :  { %v569_v14 = vrot.slane %v568_v12, 2 }
 0x120   :  { %v562_v16 = vrot.slane %v561_v13, 2 }
 0x121   :  { %v570_v17 = vmax.f32 %v568_v12, %v569_v14 }
 0x122   :  { %v563_v20 = vmax.f32 %v561_v13, %v562_v16 }
 0x123   :  { %v571_v21 = vrot.slane %v570_v17, 1 }
 0x124   :  { %v564_v28 = vrot.slane %v563_v20, 1 }
 0x125   :  { %v572_v22 = vmax.f32 %v570_v17, %v571_v21 }
 0x126   :  { %v565_v23 = vmax.f32 %v563_v20, %v564_v28 }
 0x127   :  { %v581_v24 = vadd.f32 %v755_v25, %v572_v22 }
 0x128   :  { %v580_v29 = vadd.f32 %v755_v25, %v565_v23 }
 0x129   :  { %v583_v30 = vmax.f32 %v581_v24, 0.0 }
 0x12a   :  { %v582_v31 = vmax.f32 %v580_v29, 0.0 }
 0x12b   :  { %v585_v32 = vpack.c.bf16 %v583_v30, %v583_v30 }
 0x12c   :  { %v584_v33 = vpack.c.bf16 %v582_v31, %v582_v31 }
 0x12d   :  { %v612_v26 = vunpack.c.l.b16 %v585_v32 }
 0x12e   :  { %v611_v34 = vunpack.c.l.b16 %v584_v33 }
 0x12f   :  { %v613_v35 = vrot.slane %v612_v26, 7 }
 0x131   :  { %v615_v27 = vsel %vm614_vm14, %v613_v35, %v611_v34 }
 0x132   :  { %v616_v36 = vpack.c.b16 %v615_v27, %v615_v27 }
 0x134   :  { %851 = vmatmul.mubr.bf16.vlgmr.msra.gmra.mrb[0].mxu1 %v616_v36 }
 0x207   :  { %v700_v38 = vpop.f32.mrb[0].mxu1 }
 0x208   :  { %v701_v39 = vadd.f32 %v756_v37, %v700_v38  ;;  %v852_v3 = vpop.f32.mrb[1].mxu1 }
 0x209   :  { %v703_v40 = vpop.f32.mrb[2].mxu1 }
 0x20a   :  { %706 = vst [vmem:[#allocation2] sm:$0x3] %v701_v39  ;;  %v853_v41 = vpop.f32.mrb[3].mxu1 }
 0x20b   :  { %904 = shalt.err (!%p901_p4)
}
 0x20c   :  { %s905_s5 = scalar_lea.hbm %s1180_s6, 32 }
 0x20d   :  { %p906_p5 = scmp.ne.s32.totalorder %s1180_s6, %s905_s5  ;;  %p909_p6 = scmp.lt.u32.totalorder %s905_s5, %s1180_s6 }
 0x20f   :  { %p911_p7 = pnand %p909_p6, %p906_p5 }
 0x211   :  { %914 = shalt.err (!%p911_p7)
}
 0x212   :  { %716 = dma.vmem_to_hbm [thread:$0]  %s714_s24, 32, %s1180_s6, [#allocation3]  }
 0x213   :  { %915 = dma.done.wait [#allocation3], 32  }
 0x214   :  { %916 = vsyncadd [#allocation3], 4294967264 }
 0x215   :  { %720 = vsyncpa [#allocation3], 1 }

</bundles_post_ra>
